<compile_context>
chip_gen: v5e
topology: v5e:2x2
jax: 0.10.0
libtpu: 0.0.40
codegen_flags: <defaults>
</compile_context>

<pallas_src>
import jax
import jax.numpy as jnp
from jax.experimental import pallas as pl
from jax.experimental.pallas import tpu as pltpu

HIDDEN_SIZE = 128


def _round_up(x, m):
    return ((x + m - 1) // m) * m


def _state_decoder_kernel(x_ref,
                          w1_ref, b1_ref,
                          w2_ref, b2_ref,
                          w3_ref, b3_ref,
                          w4_ref, b4_ref,
                          o_ref):
    # One (TILE_N, in) row tile per grid step; weights/biases are pinned in VMEM.
    # bf16 operands feed the MXU; accumulation and elementwise math stay in f32.
    x = x_ref[...].astype(jnp.bfloat16)

    h = jnp.dot(x, w1_ref[...], preferred_element_type=jnp.float32) + b1_ref[...]
    h = jnp.maximum(h, 0.0).astype(jnp.bfloat16)

    h = jnp.dot(h, w2_ref[...], preferred_element_type=jnp.float32) + b2_ref[...]
    h = jnp.maximum(h, 0.0).astype(jnp.bfloat16)

    h = jnp.dot(h, w3_ref[...], preferred_element_type=jnp.float32) + b3_ref[...]
    h = jnp.maximum(h, 0.0).astype(jnp.bfloat16)

    y = jnp.dot(h, w4_ref[...], preferred_element_type=jnp.float32) + b4_ref[...]
    o_ref[...] = jnp.tanh(y).astype(o_ref.dtype)


def state_decoder_forward(x, params, out_size, *, tile_n=2048,
                          out_dtype=jnp.bfloat16, expand_channels=True):
    """x: (B, L, in_size) float32. Returns (B, L, 3, out_size, out_size) in `out_dtype`.

    Note: bf16 matmuls / bf16 output are an intentional precision/throughput tradeoff
    vs. the f32 PyTorch module (f32 accumulation is kept on every dot).
    """
    B, L, in_size = x.shape
    N = B * L
    x2d = x.reshape(N, in_size)

    (w1, b1), (w2, b2), (w3, b3), (w4, b4) = params
    out_dim = out_size * out_size
    out_dim_p = _round_up(out_dim, 128)          # lane-dense output stores
    if out_dim_p != out_dim:
        w4 = jnp.pad(w4, ((0, 0), (0, out_dim_p - out_dim)))
        b4 = jnp.pad(b4, ((0, 0), (0, out_dim_p - out_dim)))

    # Row tile: multiple of 8 (sublane); capped so the grid has >= 2 steps (v7x has 2 TCs
    # sharing the parallel axis).  No padding of x: the ragged last block is handled by
    # Pallas (rows are independent; OOB output writes are masked).
    tile = min(int(tile_n), _round_up(pl.cdiv(N, 2), 8))
    tile = max(8, (tile // 8) * 8)
    grid = (pl.cdiv(N, tile),)

    row_spec = lambda shape: pl.BlockSpec(shape, lambda i: (i, 0))   # streams with the grid
    pinned = lambda shape: pl.BlockSpec(shape, lambda i: (0, 0))     # VMEM-resident weights

    out_itemsize = jax.dtypes.canonicalize_dtype(out_dtype).itemsize
    weight_bytes = sum(int(a.size) * a.dtype.itemsize
                       for a in (w1, b1, w2, b2, w3, b3, w4, b4))
    cost = pl.CostEstimate(
        flops=2 * N * (in_size * HIDDEN_SIZE
                       + 2 * HIDDEN_SIZE * HIDDEN_SIZE
                       + HIDDEN_SIZE * out_dim_p),
        transcendentals=N * out_dim_p,
        bytes_accessed=(int(x2d.size) * x2d.dtype.itemsize
                        + N * out_dim_p * out_itemsize
                        + weight_bytes),
    )

    y2d = pl.pallas_call(
        _state_decoder_kernel,
        out_shape=jax.ShapeDtypeStruct((N, out_dim_p), out_dtype),
        grid=grid,
        in_specs=[
            row_spec((tile, in_size)),
            pinned(w1.shape), pinned(b1.shape),
            pinned(w2.shape), pinned(b2.shape),
            pinned(w3.shape), pinned(b3.shape),
            pinned(w4.shape), pinned(b4.shape),
        ],
        out_specs=row_spec((tile, out_dim_p)),
        compiler_params=pltpu.CompilerParams(dimension_semantics=("parallel",)),
        cost_estimate=cost,
    )(x2d, w1, b1, w2, b2, w3, b3, w4, b4)

    if out_dim_p != out_dim:
        y2d = y2d[:, :out_dim]
    y = y2d.reshape(B, L, 1, out_size, out_size)
    if not expand_channels:
        return y
    # torch .expand() is a zero-copy view; under jit this broadcast fuses into consumers
    # rather than tripling the kernel's HBM output traffic.
    return jnp.broadcast_to(y, (B, L, 3, out_size, out_size))


def init_params(key, in_size, out_size):
    """Deterministic init mimicking PyTorch nn.Linear default U[-1/sqrt(fan_in), +].
    Weights stored as (in_dim, out_dim) in bf16 (MXU-native); biases kept in f32."""
    dims = [(in_size, HIDDEN_SIZE),
            (HIDDEN_SIZE, HIDDEN_SIZE),
            (HIDDEN_SIZE, HIDDEN_SIZE),
            (HIDDEN_SIZE, out_size * out_size)]
    params = []
    for (d_in, d_out) in dims:
        key, kw, kb = jax.random.split(key, 3)
        bound = 1.0 / jnp.sqrt(jnp.float32(d_in))
        w = jax.random.uniform(kw, (d_in, d_out), jnp.float32, -bound, bound)
        b = jax.random.uniform(kb, (1, d_out), jnp.float32, -bound, bound)
        params.append((w.astype(jnp.bfloat16), b))
    return params


def reference_forward(x, params, out_size):
    """Pure-JAX reference mirroring the kernel's numerics (bf16 operands, f32 accum)."""
    B, L, _ = x.shape
    h = x.reshape(B * L, -1)
    (w1, b1), (w2, b2), (w3, b3), (w4, b4) = params

    def dot16(a, w):
        return jnp.dot(a.astype(jnp.bfloat16), w.astype(jnp.bfloat16),
                       preferred_element_type=jnp.float32)

    h = jnp.maximum(dot16(h, w1) + b1, 0.0)
    h = jnp.maximum(dot16(h, w2) + b2, 0.0)
    h = jnp.maximum(dot16(h, w3) + b3, 0.0)
    y = jnp.tanh(dot16(h, w4) + b4)
    y = y.reshape(B, L, 1, out_size, out_size)
    return jnp.broadcast_to(y, (B, L, 3, out_size, out_size))


if __name__ == "__main__":
    B, L, in_size, out_size = 2, 8, 32, 16

    key = jax.random.PRNGKey(0)
    key, kx = jax.random.split(key)
    x = jax.random.normal(kx, (B, L, in_size), jnp.float32)
    params = init_params(key, in_size, out_size)

    out = state_decoder_forward(x, params, out_size)
    out = jax.block_until_ready(out)

    ref = reference_forward(x, params, out_size)
    assert out.shape == (B, L, 3, out_size, out_size)
    # bf16 matmul operands + bf16 output storage => ~1e-2-level agreement with the
    # (numerics-matched) f32-accumulation reference.
    assert jnp.allclose(out.astype(jnp.float32), ref, atol=2e-2, rtol=2e-2)

    print("KERNEL_OK")
</pallas_src>

<mosaic_0001>
module attributes {stable_mosaic.version = 11 : i64} {
  func.func @_state_decoder_kernel(%arg0: i32, %arg1: memref<8x32xf32, #tpu.memory_space<vmem>>, %arg2: memref<32x128xbf16, #tpu.memory_space<vmem>>, %arg3: memref<1x128xf32, #tpu.memory_space<vmem>>, %arg4: memref<128x128xbf16, #tpu.memory_space<vmem>>, %arg5: memref<1x128xf32, #tpu.memory_space<vmem>>, %arg6: memref<128x128xbf16, #tpu.memory_space<vmem>>, %arg7: memref<1x128xf32, #tpu.memory_space<vmem>>, %arg8: memref<128x256xbf16, #tpu.memory_space<vmem>>, %arg9: memref<1x256xf32, #tpu.memory_space<vmem>>, %arg10: memref<8x256xbf16, #tpu.memory_space<vmem>>) attributes {dimension_semantics = [#tpu.dimension_semantics<parallel>], iteration_bounds = array<i64: 2>, scalar_prefetch = 0 : i64, scratch_operands = 0 : i64, tpu.core_type = #tpu.core_type<tc>, window_params = [{transform_indices = @transform_0, window_bounds = array<i64: 8, 32>}, {pipeline_mode = #tpu.pipeline_mode<synchronous>, transform_indices = @transform_1, window_bounds = array<i64: 32, 128>}, {pipeline_mode = #tpu.pipeline_mode<synchronous>, transform_indices = @transform_2, window_bounds = array<i64: 1, 128>}, {pipeline_mode = #tpu.pipeline_mode<synchronous>, transform_indices = @transform_3, window_bounds = array<i64: 128, 128>}, {pipeline_mode = #tpu.pipeline_mode<synchronous>, transform_indices = @transform_4, window_bounds = array<i64: 1, 128>}, {pipeline_mode = #tpu.pipeline_mode<synchronous>, transform_indices = @transform_5, window_bounds = array<i64: 128, 128>}, {pipeline_mode = #tpu.pipeline_mode<synchronous>, transform_indices = @transform_6, window_bounds = array<i64: 1, 128>}, {pipeline_mode = #tpu.pipeline_mode<synchronous>, transform_indices = @transform_7, window_bounds = array<i64: 128, 256>}, {pipeline_mode = #tpu.pipeline_mode<synchronous>, transform_indices = @transform_8, window_bounds = array<i64: 1, 256>}, {transform_indices = @transform_9, window_bounds = array<i64: 8, 256>}]} {
    %c0 = arith.constant 0 : index
    %c0_0 = arith.constant 0 : index
    %0 = vector.load %arg1[%c0, %c0_0] : memref<8x32xf32, #tpu.memory_space<vmem>>, vector<8x32xf32>
    %1 = arith.truncf %0 : vector<8x32xf32> to vector<8x32xbf16>
    %c0_1 = arith.constant 0 : index
    %c0_2 = arith.constant 0 : index
    %2 = vector.load %arg2[%c0_1, %c0_2] : memref<32x128xbf16, #tpu.memory_space<vmem>>, vector<32x128xbf16>
    %cst = arith.constant dense<0.000000e+00> : vector<8x128xf32>
    %3 = tpu.matmul %1, %2, %cst {dimension_numbers = #tpu.dot_dimension_numbers<[1], [0], [0], [1], [0, 0, 1, 1], [], []>} : vector<8x32xbf16>, vector<32x128xbf16>, vector<8x128xf32> -> vector<8x128xf32>
    %c0_3 = arith.constant 0 : index
    %c0_4 = arith.constant 0 : index
    %4 = vector.load %arg3[%c0_3, %c0_4] : memref<1x128xf32, #tpu.memory_space<vmem>>, vector<1x128xf32>
    %5 = vector.broadcast %4 : vector<1x128xf32> to vector<8x128xf32>
    %6 = arith.addf %3, %5 : vector<8x128xf32>
    %cst_5 = arith.constant 0.000000e+00 : f32
    %7 = vector.broadcast %cst_5 : f32 to vector<8x128xf32>
    %8 = arith.maximumf %6, %7 : vector<8x128xf32>
    %9 = arith.truncf %8 : vector<8x128xf32> to vector<8x128xbf16>
    %c0_6 = arith.constant 0 : index
    %c0_7 = arith.constant 0 : index
    %10 = vector.load %arg4[%c0_6, %c0_7] : memref<128x128xbf16, #tpu.memory_space<vmem>>, vector<128x128xbf16>
    %cst_8 = arith.constant dense<0.000000e+00> : vector<8x128xf32>
    %11 = tpu.matmul %9, %10, %cst_8 {dimension_numbers = #tpu.dot_dimension_numbers<[1], [0], [0], [1], [0, 0, 1, 1], [], []>} : vector<8x128xbf16>, vector<128x128xbf16>, vector<8x128xf32> -> vector<8x128xf32>
    %c0_9 = arith.constant 0 : index
    %c0_10 = arith.constant 0 : index
    %12 = vector.load %arg5[%c0_9, %c0_10] : memref<1x128xf32, #tpu.memory_space<vmem>>, vector<1x128xf32>
    %13 = vector.broadcast %12 : vector<1x128xf32> to vector<8x128xf32>
    %14 = arith.addf %11, %13 : vector<8x128xf32>
    %cst_11 = arith.constant 0.000000e+00 : f32
    %15 = vector.broadcast %cst_11 : f32 to vector<8x128xf32>
    %16 = arith.maximumf %14, %15 : vector<8x128xf32>
    %17 = arith.truncf %16 : vector<8x128xf32> to vector<8x128xbf16>
    %c0_12 = arith.constant 0 : index
    %c0_13 = arith.constant 0 : index
    %18 = vector.load %arg6[%c0_12, %c0_13] : memref<128x128xbf16, #tpu.memory_space<vmem>>, vector<128x128xbf16>
    %cst_14 = arith.constant dense<0.000000e+00> : vector<8x128xf32>
    %19 = tpu.matmul %17, %18, %cst_14 {dimension_numbers = #tpu.dot_dimension_numbers<[1], [0], [0], [1], [0, 0, 1, 1], [], []>} : vector<8x128xbf16>, vector<128x128xbf16>, vector<8x128xf32> -> vector<8x128xf32>
    %c0_15 = arith.constant 0 : index
    %c0_16 = arith.constant 0 : index
    %20 = vector.load %arg7[%c0_15, %c0_16] : memref<1x128xf32, #tpu.memory_space<vmem>>, vector<1x128xf32>
    %21 = vector.broadcast %20 : vector<1x128xf32> to vector<8x128xf32>
    %22 = arith.addf %19, %21 : vector<8x128xf32>
    %cst_17 = arith.constant 0.000000e+00 : f32
    %23 = vector.broadcast %cst_17 : f32 to vector<8x128xf32>
    %24 = arith.maximumf %22, %23 : vector<8x128xf32>
    %25 = arith.truncf %24 : vector<8x128xf32> to vector<8x128xbf16>
    %c0_18 = arith.constant 0 : index
    %c0_19 = arith.constant 0 : index
    %26 = vector.load %arg8[%c0_18, %c0_19] : memref<128x256xbf16, #tpu.memory_space<vmem>>, vector<128x256xbf16>
    %cst_20 = arith.constant dense<0.000000e+00> : vector<8x256xf32>
    %27 = tpu.matmul %25, %26, %cst_20 {dimension_numbers = #tpu.dot_dimension_numbers<[1], [0], [0], [1], [0, 0, 1, 1], [], []>} : vector<8x128xbf16>, vector<128x256xbf16>, vector<8x256xf32> -> vector<8x256xf32>
    %c0_21 = arith.constant 0 : index
    %c0_22 = arith.constant 0 : index
    %28 = vector.load %arg9[%c0_21, %c0_22] : memref<1x256xf32, #tpu.memory_space<vmem>>, vector<1x256xf32>
    %29 = vector.broadcast %28 : vector<1x256xf32> to vector<8x256xf32>
    %30 = arith.addf %27, %29 : vector<8x256xf32>
    %31 = math.tanh %30 : vector<8x256xf32>
    %32 = arith.truncf %31 : vector<8x256xf32> to vector<8x256xbf16>
    %c0_23 = arith.constant 0 : index
    %c0_24 = arith.constant 0 : index
    %33 = vector.load %arg10[%c0_23, %c0_24] : memref<8x256xbf16, #tpu.memory_space<vmem>>, vector<8x256xbf16>
    tpu.vector_store %arg10[%c0_23, %c0_24], %32 {strides = array<i32>} : memref<8x256xbf16, #tpu.memory_space<vmem>>, vector<8x256xbf16>,
    return
  }
  func.func @transform_0(%arg0: i32) -> (i32, i32) {
    %c0_i32 = arith.constant 0 : i32
    %c0_i32_0 = arith.constant 0 : i32
    return %arg0, %c0_i32 : i32, i32
  }
  func.func @transform_1(%arg0: i32) -> (i32, i32) {
    %c0_i32 = arith.constant 0 : i32
    %c0_i32_0 = arith.constant 0 : i32
    %c0_i32_1 = arith.constant 0 : i32
    return %c0_i32, %c0_i32_0 : i32, i32
  }
  func.func @transform_2(%arg0: i32) -> (i32, i32) {
    %c0_i32 = arith.constant 0 : i32
    %c0_i32_0 = arith.constant 0 : i32
    %c0_i32_1 = arith.constant 0 : i32
    return %c0_i32, %c0_i32_0 : i32, i32
  }
  func.func @transform_3(%arg0: i32) -> (i32, i32) {
    %c0_i32 = arith.constant 0 : i32
    %c0_i32_0 = arith.constant 0 : i32
    %c0_i32_1 = arith.constant 0 : i32
    return %c0_i32, %c0_i32_0 : i32, i32
  }
  func.func @transform_4(%arg0: i32) -> (i32, i32) {
    %c0_i32 = arith.constant 0 : i32
    %c0_i32_0 = arith.constant 0 : i32
    %c0_i32_1 = arith.constant 0 : i32
    return %c0_i32, %c0_i32_0 : i32, i32
  }
  func.func @transform_5(%arg0: i32) -> (i32, i32) {
    %c0_i32 = arith.constant 0 : i32
    %c0_i32_0 = arith.constant 0 : i32
    %c0_i32_1 = arith.constant 0 : i32
    return %c0_i32, %c0_i32_0 : i32, i32
  }
  func.func @transform_6(%arg0: i32) -> (i32, i32) {
    %c0_i32 = arith.constant 0 : i32
    %c0_i32_0 = arith.constant 0 : i32
    %c0_i32_1 = arith.constant 0 : i32
    return %c0_i32, %c0_i32_0 : i32, i32
  }
  func.func @transform_7(%arg0: i32) -> (i32, i32) {
    %c0_i32 = arith.constant 0 : i32
    %c0_i32_0 = arith.constant 0 : i32
    %c0_i32_1 = arith.constant 0 : i32
    return %c0_i32, %c0_i32_0 : i32, i32
  }
  func.func @transform_8(%arg0: i32) -> (i32, i32) {
    %c0_i32 = arith.constant 0 : i32
    %c0_i32_0 = arith.constant 0 : i32
    %c0_i32_1 = arith.constant 0 : i32
    return %c0_i32, %c0_i32_0 : i32, i32
  }
  func.func @transform_9(%arg0: i32) -> (i32, i32) {
    %c0_i32 = arith.constant 0 : i32
    %c0_i32_0 = arith.constant 0 : i32
    return %arg0, %c0_i32 : i32, i32
  }
}

</mosaic_0001>

<bundles_post_ra>
// kernel: tpu_custom_call.1
= control target key start
LH: loop header
LB: loop body
LE: loop exit
PB: predicated region body
PF: predicated region fallthrough
CT: control target
= control target key end

     0   :  { %s1711_s0 = inlined_call_operand.hbm [shape: f32[16,32], index: 0, kind: input, shape index: {}]   ;;  %s1712_s1 = inlined_call_operand.hbm [shape: bf16[32,128], index: 1, kind: input, shape index: {}]   ;;  %s1713_s2 = inlined_call_operand.vmem [shape: f32[1,128], index: 2, kind: input, shape index: {}]   ;;  %s1714_s3 = inlined_call_operand.hbm [shape: bf16[128,128], index: 3, kind: input, shape index: {}]   ;;  %s1715_s4 = inlined_call_operand.hbm [shape: f32[1,128], index: 4, kind: input, shape index: {}]   ;;  %s1716_s5 = inlined_call_operand.hbm [shape: bf16[128,128], index: 5, kind: input, shape index: {}]   ;;  %s1717_s6 = inlined_call_operand.vmem [shape: f32[1,128], index: 6, kind: input, shape index: {}]   ;;  %s1718_s7 = inlined_call_operand.hbm [shape: bf16[128,256], index: 7, kind: input, shape index: {}]   ;;  %s1719_s8 = inlined_call_operand.vmem [shape: f32[1,256], index: 8, kind: input, shape index: {}]   ;;  %s1720_s9 = inlined_call_operand.hbm [shape: bf16[16,256], index: 9, kind: output, shape index: {}]  }
   0x1   :  { %1721 = sst [smem:[#allocation19_spill]] %s1712_s1 }
   0x2   :  { %1722 = sst [smem:[#allocation20_spill]] %s1714_s3 }
   0x3   :  { %1723 = sst [smem:[#allocation21_spill]] %s1715_s4 }
   0x4   :  { %14 = vsyncpa [#allocation3], 0 }
   0x5   :  { %16 = vsyncpa [#allocation3 + $0x1], 0 }
   0x6   :  { %17 = vsyncpa [#allocation6], 0 }
   0x7   :  { %18 = vsyncpa [#allocation9], 0 }
   0x8   :  { %19 = vsyncpa [#allocation12], 0 }
   0x9   :  { %20 = vsyncpa [#allocation4], 0 }
   0xa   :  { %22 = vsyncpa [#allocation4 + $0x1], 0  ;;  %s1528_s30 = smov 0   ;;  %s1530_s10 = smov 0  }
   0xb   :  { %s1532_s11 = smov 0   ;;  %s1534_s12 = smov 0  }
   0xc LB: > { %s1724_s1 = sld [smem:[#allocation19_spill]]  ;;  %s1552_s16 = sadd.s32 4294967295, %s1467_s12   ;;  %s1467_s12 = sphi %s1534_s12, %s1737_s12   ;;  %s1463_s11 = sphi %s1532_s11, %s1736_s11   ;;  %s1459_s10 = sphi %s1530_s10, %s1735_s10   ;;  %s1455_s30 = sphi %s1528_s30, %s1734_s30  }
   0xd   : > { %p907_p0 = scmp.ge.s32.totalorder %s1467_s12, 1  ;;  %p49_p1 = scmp.eq.s32.totalorder %s1552_s16, 0 }
   0xe   : > { %p253_p2 = scmp.lt.s32.totalorder %s1467_s12, 3  ;;  %s1469_s18 = smov [#allocation5]  }
   0xf   : > { %s266_s19 = sshll.u32 %s1469_s18, 4  ;;  %s1726_s4 = sld [smem:[#allocation21_spill]]  ;;  %s267_s19 = int_to_ptr.vmem [resolvable:$true] %s266_s19 }
  0x10   : > { %p1557_p3 = pnand %p907_p0, %p253_p2  ;;  %s1728_s3 = sld [smem:[#allocation20_spill]] }
  0x11   : > { %s1470_s27 = smov [#allocation8]   ;;  %s1471_s29 = smov 64  }
  0x12   : > { %s264_s15 = sshll.u32 %s1724_s1, 4  ;;  %p1125_p4 = pneg %p1557_p3  ;;  %s265_s15 = int_to_ptr.hbm [resolvable:$true] %s264_s15 }
  0x13   : > { %s298_s28 = sshll.u32 %s1470_s27, 4  ;;  %s1472_s13 = smov 4   ;;  %s299_s28 = int_to_ptr.vmem [resolvable:$true] %s298_s28 }
  0x14   : > { %p1569_p6 = pnand %p1125_p4, %p49_p1  ;;  %s307_s20 = sshll.u32 %s1716_s5, 4  ;;  %s308_s20 = int_to_ptr.hbm [resolvable:$true] %s307_s20 }
  0x15   : > { %s296_s22 = sshll.u32 %s1726_s4, 4  ;;  %s1473_s21 = smov [#allocation7]   ;;  %s297_s22 = int_to_ptr.hbm [resolvable:$true] %s296_s22 }
  0x16   : > { %s281_s26 = sshll.u32 %s1728_s3, 4  ;;  %s283_s1 = sshll.u32 %s1473_s21, 4  ;;  %s282_s26 = int_to_ptr.hbm [resolvable:$true] %s281_s26  ;;  %s284_s1 = int_to_ptr.vmem [resolvable:$true] %s283_s1 }
  0x17   : > { %1128 = dma.hbm_to_vmem [thread:$0]  (!%p1569_p6), %s265_s15, 256, %s267_s19, [#allocation6], %s1471_s29, %s1471_s29, %s1472_s13  }
  0x18   : > { %1134 = dma.hbm_to_vmem [thread:$0]  (!%p1569_p6), %s297_s22, 16, %s299_s28, [#allocation9]  }
  0x19   : > { %1131 = dma.hbm_to_vmem [thread:$0]  (!%p1569_p6), %s282_s26, 1024, %s284_s1, [#allocation6], %s1471_s29, %s1471_s29, %s1472_s13  }
  0x1a   : > { %s1474_s15 = smov [#allocation10]   ;;  %s324_s25 = sshll.u32 %s1718_s7, 4  ;;  %s325_s25 = int_to_ptr.hbm [resolvable:$true] %s324_s25 }
  0x1b   : > { %s309_s19 = sshll.u32 %s1474_s15, 4  ;;  %s1475_s27 = smov [#allocation11]   ;;  %s310_s19 = int_to_ptr.vmem [resolvable:$true] %s309_s19 }
  0x1c   : > { %1137 = dma.hbm_to_vmem [thread:$0]  (!%p1569_p6), %s308_s20, 1024, %s310_s19, [#allocation9], %s1471_s29, %s1471_s29, %s1472_s13  }
  0x1d   : > { %s326_s1 = sshll.u32 %s1475_s27, 4  ;;  %s1476_s26 = smov 128   ;;  %s327_s1 = int_to_ptr.vmem [resolvable:$true] %s326_s1 }
  0x1e   : > { %s1477_s28 = smov 8   ;;  %s906_s14 = sadd.s32 4294967294, %s1467_s12  }
  0x1f   : > { %1140 = dma.hbm_to_vmem [thread:$0]  (!%p1569_p6), %s325_s25, 2048, %s327_s1, [#allocation12], %s1476_s26, %s1476_s26, %s1477_s28  }
  0x20   : > { %s1594_s18 = sadd.s32 1, %s1467_s12   ;;  %s35_s21 = sadd.s32 1, %s1463_s11 }
  0x21   : > { %s32_s15 = ssub.s32 %s1467_s12, %s1594_s18  ;;  %p42_p7 = scmp.ne.s32.totalorder %s1463_s11, %s1459_s10 }
  0x22   : > { %p33_p8 = scmp.eq.s32.totalorder %s32_s15, 0  ;;  %p43_p9 = scmp.eq.s32.totalorder %s1467_s12, 0 }
  0x23   : > { %p48_p10 = scmp.ne.s32.totalorder %s1459_s10, %s1455_s30  ;;  %p240_p11 = scmp.eq.s32.totalorder %s1552_s16, 1 }
  0x24   : > { %s1606_s29 = scalar_select %p33_p8, %s1463_s11, %s35_s21  }
  0x25   : > { %p1610_p12 = por %p49_p1, %p48_p10  ;;  %p1614_p13 = por %p240_p11, %p42_p7 }
  0x26   : > { %p246_p0 = scmp.eq.s32.totalorder %s906_s14, 1  ;;  %p44_p2 = por %p43_p9, %p42_p7 }
  0x27   : > { %s343_s20 = sand.u32 1, %s1463_s11   ;;  %p1154_p6 = scmp.lt.s32.totalorder %s1467_s12, 2 }
  0x28   : > { %p1619_p4 = por %p246_p0, %p48_p10  ;;  %s914_s22 = sshll.u32 %s343_s20, 3 }
  0x29   : > { %s915_s24 = sshll.u32 %s1467_s12, 3  ;;  %s347_s28 = scalar_lea.vmem [#allocation2], %s914_s22 }
  0x2a   : > { %s351_s1 = scalar_lea.hbm %s1711_s0, %s915_s24  ;;  %s355_s21 = sshll.u32 %s347_s28, 4  ;;  %s356_s21 = int_to_ptr.vmem [resolvable:$true] %s355_s21 }
  0x2b   : > { %s353_s26 = sshll.u32 %s351_s1, 4  ;;  %p1628_p8 = pnand %p1154_p6, %p44_p2  ;;  %s354_s26 = int_to_ptr.hbm [resolvable:$true] %s353_s26 }
  0x2c   : > { %s344_s15 = scalar_lea.sflag [#allocation3], %s343_s20  ;;  %s1359_s3 = sshra.s32 %s354_s26, 4  ;;  %s1360_s3 = int_to_ptr.hbm [resolvable:$true] %s1359_s3 }
  0x2d   : > { %s1361_s4 = scalar_lea.hbm %s1360_s3, 8  ;;  %p1363_p9 = pneg %p1628_p8 }
  0x2e   : > { %p1362_p7 = scmp.ne.s32.totalorder %s1360_s3, %s1361_s4  ;;  %s1366_s22 = scalar_lea.hbm %s1711_s0, 16 }
  0x2f   : > { %p1367_p0 = scmp.lt.s32.totalorder %s1360_s3, %s1711_s0  ;;  %p1368_p2 = scmp.lt.s32.totalorder %s1366_s22, %s1361_s4 }
  0x30   : > { %p1364_p10 = pnand %p1363_p9, %p1362_p7 }
  0x31   : > { %p1369_p6 = por %p1368_p2, %p1367_p0 }
  0x32   : > { %p1365_p11 = pneg %p1364_p10 }
  0x34   : > { %p1370_p5 = pnand %p1369_p6, %p1365_p11 }
  0x36   : > { %1373 = shalt.err (!%p1370_p5)
}
  0x37   : > { %1144 = dma.hbm_to_vmem [thread:$0]  (!%p1628_p8), %s354_s26, 128, %s356_s21, %s344_s15  }
  0x38   : > { %364 = sbr.rel (%p1557_p3) target bundleno = 624 (0x270), region = 56  ;;  %s1645_s20 = sand.u32 (!%p1557_p3), 1, %s1459_s10  }
  0x39   : > { %s917_s28 = sshll.u32 (!%p1557_p3), %s1645_s20, 3  ;;  %s367_s24 = scalar_lea.sflag (!%p1557_p3), [#allocation3], %s1645_s20 }
  0x3a   : > { %s370_s3 = scalar_lea.vmem (!%p1557_p3), [#allocation2], %s917_s28 }
  0x3d   : > { %1434 = dma.done.wait (%p1610_p12), %s367_s24, 128  }
  0x3e   : > { %1436 = vsyncadd (%p1610_p12), %s367_s24, 4294967168 }
  0x3f   : > { %1438 = dma.done.wait (%p49_p1), [#allocation6], 1280  }
  0x40   : > { %1440 = vsyncadd (%p49_p1), [#allocation6], 4294966016 }
  0x41   : > { %1442 = dma.done.wait (%p49_p1), [#allocation9], 1040  }
  0x42   : > { %1444 = vsyncadd (%p49_p1), [#allocation9], 4294966256 }
  0x43   : > { %1446 = dma.done.wait (%p49_p1), [#allocation12], 2048  }
  0x44   : > { %1448 = vsyncadd (%p49_p1), [#allocation12], 4294965248  ;;  %v1067_v0 = vld [vmem:[#allocation5 + $0x8] sm:$0xff]  ;;  %v1066_v2 = vld [vmem:[#allocation5] sm:$0xff]  ;;  %vm454_vm0 = vcmask 261120   ;;  %s1100_s15 = sshll.u32 %s1552_s16, 3 }
  0x45   : > { %v1075_v1 = vld [vmem:[#allocation7 + $0x38] sm:$0xff]  ;;  %464 = vmatpush.bf16.msra.mxu0 %v1067_v0  ;;  %v432_v3 = vld [vmem:[%s370_s3] sm:$0xff]  ;;  %v1074_v4 = vld [vmem:[#allocation7 + $0x30] sm:$0xff]  ;;  %s783_s27 = scalar_lea.hbm %s1720_s9, %s1100_s15  ;;  %s430_s1 = scalar_lea.vmem [#allocation13], %s917_s28 }
  0x46   : > { %541 = vmatpush.bf16.msra.mxu1 %v1075_v1  ;;  %v433_v5 = vpack.c.bf16 %v432_v3, %v432_v3  ;;  %v1073_v6 = vld [vmem:[#allocation7 + $0x28] sm:$0xff]  ;;  %v1072_v7 = vld [vmem:[#allocation7 + $0x20] sm:$0xff]  ;;  %v1071_v8 = vld [vmem:[#allocation7 + $0x18] sm:$0xff]  ;;  %s785_s24 = sshll.u32 %s430_s1, 4  ;;  %s787_s3 = sshll.u32 %s783_s27, 4  ;;  %s786_s24 = int_to_ptr.vmem [resolvable:$true] %s785_s24  ;;  %s788_s3 = int_to_ptr.hbm [resolvable:$true] %s787_s3 }
  0x47   : > { %v1070_v9 = vld [vmem:[#allocation7 + $0x10] sm:$0xff]  ;;  %v1069_v10 = vld [vmem:[#allocation7 + $0x8] sm:$0xff]  ;;  %v1068_v11 = vld [vmem:[#allocation7] sm:$0xff]  ;;  %s772_s16 = scalar_lea.sflag [#allocation4], %s1645_s20  ;;  %s1403_s4 = sshra.s32 %s788_s3, 4  ;;  %s1404_s4 = int_to_ptr.hbm [resolvable:$true] %s1403_s4 }
  0x48   : > { %v1083_v12 = vld [vmem:[#allocation10 + $0x38] sm:$0xff]  ;;  %v1082_v13 = vld [vmem:[#allocation10 + $0x30] sm:$0xff]  ;;  %v1081_v14 = vld [vmem:[#allocation10 + $0x28] sm:$0xff]  ;;  %s1405_s17 = scalar_lea.hbm %s1404_s4, 8  ;;  %s1409_s28 = scalar_lea.hbm %s1720_s9, 16 }
  0x49   : > { %465 = vmatpush.bf16.msra.mxu0 %v1066_v2  ;;  %624 = vmatpush.bf16.msra.mxu2 %v1083_v12  ;;  %v1080_v15 = vld [vmem:[#allocation10 + $0x20] sm:$0xff]  ;;  %v1079_v16 = vld [vmem:[#allocation10 + $0x18] sm:$0xff]  ;;  %v1078_v17 = vld [vmem:[#allocation10 + $0x10] sm:$0xff]  ;;  %p1406_p1 = scmp.ne.s32.totalorder %s1404_s4, %s1405_s17  ;;  %p1410_p12 = scmp.lt.s32.totalorder %s1404_s4, %s1720_s9 }
  0x4a   : > { %542 = vmatpush.bf16.msra.mxu1 %v1074_v4  ;;  %v1202_v18 = vld [vmem:[%s1713_s2] ss:$0 sm:$0xff]  ;;  %v1077_v24 = vld [vmem:[#allocation10 + $0x8] sm:$0xff]  ;;  %v1076_v25 = vld [vmem:[#allocation10] sm:$0xff]  ;;  %p1411_p8 = scmp.lt.s32.totalorder %s1409_s28, %s1405_s17 }
  0x4b   : > { %v1055_v26 = vld [vmem:[#allocation11 + $0x70] sm:$0xf]  ;;  %v1099_v27 = vld [vmem:[#allocation11 + $0x74] sm:$0xf0]  ;;  %v1098_v28 = vld [vmem:[#allocation11 + $0x74] sm:$0xf]  ;;  %p1407_p3 = pnand %p1406_p1, %p1614_p13 }
  0x4c   : > { %932 = vmatmul.msk.bf16.vlgmr.msra.gmra.mxu0 %vm454_vm0, %v433_v5  ;;  %v1056_v29 = vor.u32 %v1099_v27, %v1055_v26  ;;  %v1057_v30 = vld [vmem:[#allocation11 + $0x78] sm:$0xf0]  ;;  %v1047_v31 = vld [vmem:[#allocation11 + $0x60] sm:$0xf]  ;;  %v1097_v32 = vld [vmem:[#allocation11 + $0x64] sm:$0xf0]  ;;  %p1412_p7 = por %p1411_p8, %p1410_p12 }
  0x4d   : > { %625 = vmatpush.bf16.msra.mxu2 %v1082_v13  ;;  %v1060_v33 = vor.u32 %v1098_v28, %v1057_v30  ;;  %v1096_v34 = vld [vmem:[#allocation11 + $0x64] sm:$0xf]  ;;  %v1049_v35 = vld [vmem:[#allocation11 + $0x68] sm:$0xf0]  ;;  %v1048_v36 = vor.u32 %v1097_v32, %v1047_v31  ;;  %v1039_v38 = vld [vmem:[#allocation11 + $0x50] sm:$0xf]  ;;  %p1408_p5 = pneg %p1407_p3 }
  0x4e   : > { %543 = vmatpush.bf16.msra.mxu1 %v1073_v6  ;;  %741 = vmatpush.bf16.msra.mxu3 %v1056_v29  ;;  %v1052_v37 = vor.u32 %v1096_v34, %v1049_v35  ;;  %v1095_v39 = vld [vmem:[#allocation11 + $0x54] sm:$0xf0]  ;;  %v1094_v40 = vld [vmem:[#allocation11 + $0x54] sm:$0xf]  ;;  %v1041_v41 = vld [vmem:[#allocation11 + $0x58] sm:$0xf0] }
  0x4f   : > { %754 = vmatpush.bf16.msrb.mxu0 %v1060_v33  ;;  %v1040_v42 = vor.u32 %v1095_v39, %v1039_v38  ;;  %v1044_v43 = vor.u32 %v1094_v40, %v1041_v41  ;;  %v1031_v44 = vld [vmem:[#allocation11 + $0x40] sm:$0xf]  ;;  %v1093_v45 = vld [vmem:[#allocation11 + $0x44] sm:$0xf0]  ;;  %v1092_v46 = vld [vmem:[#allocation11 + $0x44] sm:$0xf]  ;;  %p1413_p9 = pnand %p1412_p7, %p1408_p5 }
  0x50   : > { %v1033_v47 = vld [vmem:[#allocation11 + $0x48] sm:$0xf0]  ;;  %v1032_v48 = vor.u32 %v1093_v45, %v1031_v44  ;;  %v1023_v50 = vld [vmem:[#allocation11 + $0x30] sm:$0xf]  ;;  %v1091_v51 = vld [vmem:[#allocation11 + $0x34] sm:$0xf0] }
  0x51   : > { %626 = vmatpush.bf16.msra.mxu2 %v1081_v14  ;;  %v1036_v49 = vor.u32 %v1092_v46, %v1033_v47  ;;  %v1090_v52 = vld [vmem:[#allocation11 + $0x34] sm:$0xf]  ;;  %v1025_v53 = vld [vmem:[#allocation11 + $0x38] sm:$0xf0]  ;;  %v1024_v54 = vor.u32 %v1091_v51, %v1023_v50  ;;  %v1015_v56 = vld [vmem:[#allocation11 + $0x20] sm:$0xf] }
  0x52   : > { %544 = vmatpush.bf16.msra.mxu1 %v1072_v7  ;;  %742 = vmatpush.bf16.msra.mxu3 %v1048_v36  ;;  %v1028_v55 = vor.u32 %v1090_v52, %v1025_v53  ;;  %v1089_v57 = vld [vmem:[#allocation11 + $0x24] sm:$0xf0]  ;;  %v1088_v58 = vld [vmem:[#allocation11 + $0x24] sm:$0xf]  ;;  %v1017_v59 = vld [vmem:[#allocation11 + $0x28] sm:$0xf0] }
  0x53   : > { %755 = vmatpush.bf16.msrb.mxu0 %v1052_v37  ;;  %v1016_v60 = vor.u32 %v1089_v57, %v1015_v56  ;;  %v1020_v61 = vor.u32 %v1088_v58, %v1017_v59  ;;  %v1203_v62 = vld [vmem:[#allocation8] ss:$0 sm:$0xff]  ;;  %v1007_v4 = vld [vmem:[#allocation11 + $0x10] sm:$0xf]  ;;  %v1087_v5 = vld [vmem:[#allocation11 + $0x14] sm:$0xf0] }
  0x54   : > { %v1086_v6 = vld [vmem:[#allocation11 + $0x14] sm:$0xf]  ;;  %v1008_v7 = vor.u32 %v1087_v5, %v1007_v4  ;;  %v1084_v12 = vld [vmem:[#allocation11 + $0x4] sm:$0xf]  ;;  %v1001_v14 = vld [vmem:[#allocation11 + $0x8] sm:$0xf0] }
  0x55   : > { %627 = vmatpush.bf16.msra.mxu2 %v1080_v15  ;;  %v1004_v15 = vor.u32 %v1084_v12, %v1001_v14 }
  0x56   : > { %545 = vmatpush.bf16.msra.mxu1 %v1071_v8  ;;  %743 = vmatpush.bf16.msra.mxu3 %v1040_v42  ;;  %v1009_v8 = vld [vmem:[#allocation11 + $0x18] sm:$0xf0] }
  0x57   : > { %756 = vmatpush.bf16.msrb.mxu0 %v1044_v43 }
  0x59   : > { %628 = vmatpush.bf16.msra.mxu2 %v1079_v16  ;;  %v1204_v16 = vld [vmem:[%s1717_s6] ss:$0 sm:$0xff] }
  0x5a   : > { %546 = vmatpush.bf16.msra.mxu1 %v1070_v9  ;;  %744 = vmatpush.bf16.msra.mxu3 %v1032_v48  ;;  %v1012_v9 = vor.u32 %v1086_v6, %v1009_v8 }
  0x5b   : > { %757 = vmatpush.bf16.msrb.mxu0 %v1036_v49 }
  0x5d   : > { %629 = vmatpush.bf16.msra.mxu2 %v1078_v17 }
  0x5e   : > { %547 = vmatpush.bf16.msra.mxu1 %v1069_v10  ;;  %745 = vmatpush.bf16.msra.mxu3 %v1024_v54  ;;  %v999_v10 = vld [vmem:[#allocation11] sm:$0xf] }
  0x5f   : > { %758 = vmatpush.bf16.msrb.mxu0 %v1028_v55 }
  0x61   : > { %630 = vmatpush.bf16.msra.mxu2 %v1077_v24 }
  0x62   : > { %548 = vmatpush.bf16.msra.mxu1 %v1068_v11  ;;  %746 = vmatpush.bf16.msra.mxu3 %v1016_v60  ;;  %v1085_v11 = vld [vmem:[#allocation11 + $0x4] sm:$0xf0] }
  0x63   : > { %759 = vmatpush.bf16.msrb.mxu0 %v1020_v61  ;;  %v1000_v13 = vor.u32 %v1085_v11, %v999_v10 }
  0x65   : > { %631 = vmatpush.bf16.msra.mxu2 %v1076_v25 }
  0x66   : > { %747 = vmatpush.bf16.msra.mxu3 %v1008_v7 }
  0x67   : > { %760 = vmatpush.bf16.msrb.mxu0 %v1012_v9 }
  0x6a   : > { %748 = vmatpush.bf16.msra.mxu3 %v1000_v13 }
  0x6b   : > { %761 = vmatpush.bf16.msrb.mxu0 %v1004_v15 }
  0xc9   : > { %v467_v19 = vpop.f32.mrf.mxu0 }
  0xca   : > { %v468_v20 = vadd.f32 %v1202_v18, %v467_v19 }
  0xcc   : > { %v471_v21 = vmax.f32 %v468_v20, 0.0 }
  0xce   : > { %v472_v22 = vpack.c.bf16 %v471_v21, %v471_v21 }
  0xd0   : > { %549 = vmatmul.bf16.vlgmr.msra.gmra.mxu1 %v472_v22  ;;  %v655_v22 = vld [vmem:[%s1719_s8] sm:$0x3] }
  0xd1   : > { %v469_v23 = vpop.f32.mrf.mxu0  ;;  %v657_v25 = vperm.slane %v655_v22, 0 }
  0xd2   : > { %v658_v23 = vperm.slane %v655_v22, 1 }
 0x14d   : > { %v550_v63 = vpop.f32.mrf.mxu1 }
 0x14e   : > { %v551_v0 = vadd.f32 %v1203_v62, %v550_v63 }
 0x150   : > { %v554_v1 = vmax.f32 %v551_v0, 0.0 }
 0x152   : > { %v555_v2 = vpack.c.bf16 %v554_v1, %v554_v1 }
 0x154   : > { %632 = vmatmul.bf16.vlgmr.msra.gmra.mxu2 %v555_v2 }
 0x155   : > { %v552_v3 = vpop.f32.mrf.mxu1 }
 0x1d7   : > { %v633_v17 = vpop.f32.mrf.mxu2 }
 0x1d8   : > { %v634_v18 = vadd.f32 %v1204_v16, %v633_v17 }
 0x1da   : > { %v637_v19 = vmax.f32 %v634_v18, 0.0 }
 0x1dc   : > { %v638_v20 = vpack.c.bf16 %v637_v19, %v637_v19 }
 0x1de   : > { %749 = vmatmul.bf16.vlgmr.msra.gmra.mxu3 %v638_v20  ;;  %762 = vmatmul.bf16.vlgmr.msrb.gmra.mxu0 %v638_v20 }
 0x1df   : > { %v635_v21 = vpop.f32.mrf.mxu2 }
 0x25b   : > { %v763_v24 = vpop.f32.mrf.mxu0 }
 0x25c   : > { %v764_v26 = vadd.f32 %v763_v24, %v658_v23 }
 0x25e   : > { %1205 = vtanh.f32 %v764_v26 }
 0x261   : > { %v750_v27 = vpop.f32.mrf.mxu3 }
 0x262   : > { %v751_v28 = vadd.f32 %v750_v27, %v657_v25 }
 0x263   : > { %v765_v29 = vpop.f32.mrf.mxu0 }
 0x264   : > { %1207 = vtanh.f32 %v751_v28  ;;  %v1206_v30 = vpop.eup %1205 }
 0x269   : > { %v752_v31 = vpop.f32.mrf.mxu3 }
 0x26a   : > { %v1208_v32 = vpop.eup %1207 }
 0x26b   : > { %v769_v33 = vpack.c.bf16 %v1206_v30, %v1208_v32 }
 0x26d   : > { %770 = vst [vmem:[%s430_s1] sm:$0xff] %v769_v33 }
 0x26e   : > { %1416 = shalt.err (!%p1413_p9)
}
 0x26f   : > { %1123 = dma.vmem_to_hbm [thread:$0]  (%p1614_p13), %s786_s24, 128, %s788_s3, %s772_s16  }
 0x270 PF: > { %s799_s20 = sand.u32 1, %s1455_s30   ;;  %p1733_p10 = scmp.ge.s32.totalorder %s1467_s12, 2 }
 0x271   : > { %s800_s15 = scalar_lea.sflag [#allocation4], %s799_s20 }
 0x272   : > { %p1146_p11 = pnand %p1733_p10, %p1619_p4 }
 0x274   : > { %p1147_p0 = pneg %p1146_p11 }
 0x276   : > { %1450 = dma.done.wait (%p1147_p0), %s800_s15, 128  }
 0x277   : > { %1452 = vsyncadd (%p1147_p0), %s800_s15, 4294967168  ;;  %p25_p2 = scmp.ge.s32.totalorder %s1594_s18, 4   ;;  %s1734_s30 = smov %s1459_s10 }
 0x278   : > { %s1735_s10 = smov %s1463_s11  ;;  %s1736_s11 = smov %s1606_s29 }
 0x279   : > { %s1737_s12 = smov %s1594_s18  ;;  %27 = sbr.rel (!%p25_p2) target bundleno = 12 (0xc), region = 121 }
 0x27e   :  { %806 = vsyncpa [#allocation3], 1 }
 0x27f   :  { %808 = vsyncpa [#allocation3 + $0x1], 1 }
 0x280   :  { %809 = vsyncpa [#allocation6], 1 }
 0x281   :  { %810 = vsyncpa [#allocation9], 1 }
 0x282   :  { %811 = vsyncpa [#allocation12], 1 }
 0x283   :  { %812 = vsyncpa [#allocation4], 1 }
 0x284   :  { %814 = vsyncpa [#allocation4 + $0x1], 1 }

</bundles_post_ra>
